<compile_context>
chip_gen: v7x
topology: tpu7x:2x2x1
jax: 0.10.0
libtpu: 0.0.40
codegen_flags: <defaults>
</compile_context>

<pallas_src>
import functools

import jax
import jax.numpy as jnp
from jax import lax
from jax.experimental import pallas as pl
from jax.experimental.pallas import tpu as pltpu

_MB = 1024 * 1024


def _round_up(x, m):
    return ((x + m - 1) // m) * m


def _vmem_limit_bytes():
    """Generation-gated scoped-VMEM limit (~half of physical VMEM)."""
    try:
        cap = int(pltpu.get_tpu_info().vmem_capacity_bytes)
    except Exception:  # interpret mode / older API -> conservative default
        cap = 64 * _MB
    # v5e/v6e (128 MiB) -> 64 MiB scoped; v7x (64 MiB) -> 32 MiB scoped.
    return int(min(96 * _MB, max(32 * _MB, cap // 2)))


# ----------------------------------------------------------------------------
# Conv path: single im2col matmul, weights VMEM-resident
# ----------------------------------------------------------------------------
def _conv_matmul_kernel(a_ref, w_ref, b_ref, o_ref):
    # a: (tm, K) im2col tile   w: (K, tn) resident weights   b: (1, tn) bias
    o_ref[...] = (jnp.dot(a_ref[...], w_ref[...],
                          preferred_element_type=jnp.float32)
                  + b_ref[...]).astype(o_ref.dtype)


def _pick_conv_tiles(M, K, N_pad, vmem_limit):
    budget = int(vmem_limit * 0.6)
    # Prefer a single output-column tile so the (big) im2col A is read exactly
    # once; fall back to smaller lane-multiple tiles for very large Cout.
    tn = 128
    for cand in (N_pad, 1024, 512, 256, 128):
        if (cand <= N_pad and N_pad % cand == 0 and cand % 128 == 0
                and 2 * K * cand * 4 <= budget // 2):
            tn = cand
            break
    remaining = budget - 2 * K * tn * 4
    tm = 8
    for cand in (1024, 512, 256, 128, 64, 32, 16, 8):
        if 2 * cand * (K + tn) * 4 > remaining:
            continue
        # min(): small problems get a whole-M tile, big ones get >= 2 M tiles
        # (keeps both v7x TensorCores busy on the "parallel" axis).
        tm = min(cand, _round_up(M, 8))
        break
    return tm, tn


def _conv_downsample(x_nchw, weight, bias, use_bf16=False):
    B, C, H, W = x_nchw.shape
    Cout = weight.shape[0]

    # F.pad(x, (0,1,0,1)) -> right/bottom zero pad, then 3x3 stride-2 VALID.
    Hp, Wp = H + 1, W + 1
    Ho = (Hp - 3) // 2 + 1
    Wo = (Wp - 3) // 2 + 1
    M = B * Ho * Wo
    K = 9 * C

    # Single fused im2col build (pad + transpose + 9 stride-2 taps + concat).
    xp = jnp.pad(x_nchw, ((0, 0), (0, 0), (0, 1), (0, 1)))
    x_nhwc = jnp.transpose(xp, (0, 2, 3, 1))                 # (B, Hp, Wp, C)
    cols = []
    for kh in range(3):
        for kw in range(3):
            p = lax.slice(
                x_nhwc,
                (0, kh, kw, 0),
                (B, kh + 2 * (Ho - 1) + 1, kw + 2 * (Wo - 1) + 1, C),
                (1, 2, 2, 1),
            )                                                # (B, Ho, Wo, C)
            cols.append(p)
    a = jnp.concatenate(cols, axis=-1).reshape(M, K)         # tap-major, C-minor

    # torch weight (Cout, Cin, kh, kw) -> (kh, kw, Cin, Cout) -> (9*Cin, Cout)
    w = jnp.transpose(weight, (2, 3, 1, 0)).reshape(K, Cout)

    N_pad = _round_up(Cout, 128)
    vmem_limit = _vmem_limit_bytes()
    tm, tn = _pick_conv_tiles(M, K, N_pad, vmem_limit)
    M_pad = _round_up(M, tm)

    if M_pad != M:
        a = jnp.pad(a, ((0, M_pad - M), (0, 0)))
    if N_pad != Cout:
        w = jnp.pad(w, ((0, 0), (0, N_pad - Cout)))
        b_row = jnp.pad(bias, (0, N_pad - Cout)).reshape(1, N_pad)
    else:
        b_row = bias.reshape(1, N_pad)

    if use_bf16:  # optional bf16 MXU feed with f32 accumulation (v6e/v7x)
        a = a.astype(jnp.bfloat16)
        w = w.astype(jnp.bfloat16)

    grid = (M_pad // tm, N_pad // tn)
    flops = 2 * M_pad * K * N_pad
    bytes_accessed = 4 * (M_pad * K + K * N_pad + M_pad * N_pad + N_pad)

    out = pl.pallas_call(
        _conv_matmul_kernel,
        out_shape=jax.ShapeDtypeStruct((M_pad, N_pad), jnp.float32),
        grid=grid,
        in_specs=[
            pl.BlockSpec((tm, K), lambda i, j: (i, 0)),      # A: streamed once
            pl.BlockSpec((K, tn), lambda i, j: (0, j)),      # W: VMEM-resident
            pl.BlockSpec((1, tn), lambda i, j: (0, j)),      # bias
        ],
        out_specs=pl.BlockSpec((tm, tn), lambda i, j: (i, j)),
        compiler_params=pltpu.CompilerParams(
            dimension_semantics=("parallel", "parallel"),
            vmem_limit_bytes=vmem_limit,
        ),
        cost_estimate=pl.CostEstimate(
            flops=flops, transcendentals=0, bytes_accessed=bytes_accessed),
    )(a, w, b_row)

    out = out[:M, :Cout].reshape(B, Ho, Wo, Cout)
    # Module contract is NCHW; fusing this layout change into the consumer is
    # out of scope here.
    return jnp.transpose(out, (0, 3, 1, 2))


# ----------------------------------------------------------------------------
# Avg-pool path: read-once tiled 2x2/stride-2 pooling, lane-dense output
# ----------------------------------------------------------------------------
def _avgpool_kernel(x_ref, p_ref, o_ref):
    # x: (tr, g*2*Wc) grouped 2-row bands; p: block-diag 0/1*0.25 pool matrix
    # (VMEM-resident); o: (tr, g*Wo) lane-dense output slab.
    o_ref[...] = jnp.dot(x_ref[...], p_ref[...],
                         preferred_element_type=jnp.float32)


def _pick_pool_tr(R, in_cols, out_cols, pool_bytes, vmem_limit):
    budget = int(vmem_limit * 0.6) - 2 * pool_bytes
    for cand in (1024, 512, 256, 128, 64, 32, 16, 8):
        if 2 * cand * (in_cols + out_cols) * 4 > budget:
            continue
        return min(cand, _round_up(R, 8))
    return 8


def _avgpool_downsample(x_nchw):
    B, C, H, W = x_nchw.shape
    Ho, Wo = H // 2, W // 2
    Wc = 2 * Wo
    rows = B * C * Ho
    x = x_nchw[:, :, : 2 * Ho, :Wc].reshape(rows, 2 * Wc)    # free reshape

    # Group g pooled rows per output slab row so stores are lane-dense.
    g = max(1, -(-128 // Wo))
    in_cols = g * 2 * Wc
    out_cols = g * Wo

    # Exact per-band pooling matrix with the 0.25 scale folded in, expanded
    # block-diagonally for the g-row group.
    col = (jnp.arange(2 * Wc) % Wc) // 2
    p_small = 0.25 * (col[:, None] == jnp.arange(Wo)[None, :]).astype(jnp.float32)
    pool = jnp.kron(jnp.eye(g, dtype=jnp.float32), p_small)  # (in_cols, out_cols)

    R = -(-rows // g)
    vmem_limit = _vmem_limit_bytes()
    tr = _pick_pool_tr(R, in_cols, out_cols, int(pool.size) * 4, vmem_limit)
    R_pad = _round_up(R, tr)
    if R_pad * g != rows:
        x = jnp.pad(x, ((0, R_pad * g - rows), (0, 0)))
    xg = x.reshape(R_pad, in_cols)

    out = pl.pallas_call(
        _avgpool_kernel,
        out_shape=jax.ShapeDtypeStruct((R_pad, out_cols), jnp.float32),
        grid=(R_pad // tr,),
        in_specs=[
            pl.BlockSpec((tr, in_cols), lambda i: (i, 0)),
            pl.BlockSpec((in_cols, out_cols), lambda i: (0, 0)),  # resident
        ],
        out_specs=pl.BlockSpec((tr, out_cols), lambda i: (i, 0)),
        compiler_params=pltpu.CompilerParams(
            dimension_semantics=("parallel",),
            vmem_limit_bytes=vmem_limit,
        ),
        cost_estimate=pl.CostEstimate(
            flops=2 * R_pad * in_cols * out_cols, transcendentals=0,
            bytes_accessed=4 * (R_pad * in_cols + int(pool.size)
                                + R_pad * out_cols)),
    )(xg, pool)

    return out.reshape(R_pad * g, Wo)[:rows].reshape(B, C, Ho, Wo)


# ----------------------------------------------------------------------------
# Public forward
# ----------------------------------------------------------------------------
@functools.partial(jax.jit, static_argnames=("with_conv", "use_bf16"))
def downsample_forward(x_nchw, weight, bias, with_conv=True, use_bf16=False):
    """x_nchw: (B, C, H, W) f32. weight: (Cout, Cin, 3, 3). bias: (Cout,)."""
    if with_conv:
        return _conv_downsample(x_nchw, weight, bias, use_bf16=use_bf16)
    return _avgpool_downsample(x_nchw)


# ----------------------------------------------------------------------------
# Reference (pure JAX) for correctness checking
# ----------------------------------------------------------------------------
def downsample_reference(x_nchw, weight, bias, with_conv=True):
    if with_conv:
        xp = jnp.pad(x_nchw, ((0, 0), (0, 0), (0, 1), (0, 1)))
        out = lax.conv_general_dilated(
            xp, weight, window_strides=(2, 2), padding="VALID",
            dimension_numbers=("NCHW", "OIHW", "NCHW"))
        return out + bias.reshape(1, -1, 1, 1)
    else:
        return lax.reduce_window(
            x_nchw, 0.0, lax.add,
            window_dimensions=(1, 1, 2, 2),
            window_strides=(1, 1, 2, 2),
            padding="VALID") * 0.25


if __name__ == "__main__":
    key = jax.random.PRNGKey(0)
    k_x, k_w, k_b = jax.random.split(key, 3)

    B, C, H, W = 2, 4, 16, 16
    x = jax.random.normal(k_x, (B, C, H, W), dtype=jnp.float32)

    # Deterministic synthetic params for nn.Conv2d(C, C, 3, stride=2, padding=0)
    fan_in = C * 3 * 3
    bound = 1.0 / jnp.sqrt(fan_in)
    weight = jax.random.uniform(k_w, (C, C, 3, 3), jnp.float32, -bound, bound)
    bias = jax.random.uniform(k_b, (C,), jnp.float32, -bound, bound)

    # with_conv=True path (module default)
    y = downsample_forward(x, weight, bias, with_conv=True)
    y = jax.block_until_ready(y)
    y_ref = downsample_reference(x, weight, bias, with_conv=True)
    assert y.shape == (B, C, 8, 8), y.shape
    assert jnp.allclose(y, y_ref, atol=1e-5, rtol=1e-5)

    # with_conv=False path (avg_pool2d)
    y2 = downsample_forward(x, weight, bias, with_conv=False)
    y2 = jax.block_until_ready(y2)
    y2_ref = downsample_reference(x, weight, bias, with_conv=False)
    assert y2.shape == (B, C, 8, 8), y2.shape
    assert jnp.allclose(y2, y2_ref, atol=1e-5, rtol=1e-5)

    print("KERNEL_OK")
</pallas_src>

<mosaic_0001>
module attributes {stable_mosaic.version = 11 : i64} {
  func.func @_conv_matmul_kernel(%arg0: i32, %arg1: i32, %arg2: memref<128x36xf32, #tpu.memory_space<vmem>>, %arg3: memref<36x128xf32, #tpu.memory_space<vmem>>, %arg4: memref<1x128xf32, #tpu.memory_space<vmem>>, %arg5: memref<128x128xf32, #tpu.memory_space<vmem>>) attributes {dimension_semantics = [#tpu.dimension_semantics<parallel>, #tpu.dimension_semantics<parallel>], iteration_bounds = array<i64: 1, 1>, scalar_prefetch = 0 : i64, scratch_operands = 0 : i64, tpu.core_type = #tpu.core_type<tc>, window_params = [{transform_indices = @transform_0, window_bounds = array<i64: 128, 36>}, {transform_indices = @transform_1, window_bounds = array<i64: 36, 128>}, {transform_indices = @transform_2, window_bounds = array<i64: 1, 128>}, {transform_indices = @transform_3, window_bounds = array<i64: 128, 128>}]} {
    %c0 = arith.constant 0 : index
    %c0_0 = arith.constant 0 : index
    %0 = vector.load %arg2[%c0, %c0_0] : memref<128x36xf32, #tpu.memory_space<vmem>>, vector<128x36xf32>
    %c0_1 = arith.constant 0 : index
    %c0_2 = arith.constant 0 : index
    %1 = vector.load %arg3[%c0_1, %c0_2] : memref<36x128xf32, #tpu.memory_space<vmem>>, vector<36x128xf32>
    %cst = arith.constant dense<0.000000e+00> : vector<128x128xf32>
    %2 = tpu.matmul %0, %1, %cst {dimension_numbers = #tpu.dot_dimension_numbers<[1], [0], [0], [1], [0, 0, 1, 1], [], []>} : vector<128x36xf32>, vector<36x128xf32>, vector<128x128xf32> -> vector<128x128xf32>
    %c0_3 = arith.constant 0 : index
    %c0_4 = arith.constant 0 : index
    %3 = vector.load %arg4[%c0_3, %c0_4] : memref<1x128xf32, #tpu.memory_space<vmem>>, vector<1x128xf32>
    %4 = vector.broadcast %3 : vector<1x128xf32> to vector<128x128xf32>
    %5 = arith.addf %2, %4 : vector<128x128xf32>
    %c0_5 = arith.constant 0 : index
    %c0_6 = arith.constant 0 : index
    %6 = vector.load %arg5[%c0_5, %c0_6] : memref<128x128xf32, #tpu.memory_space<vmem>>, vector<128x128xf32>
    tpu.vector_store %arg5[%c0_5, %c0_6], %5 {strides = array<i32>} : memref<128x128xf32, #tpu.memory_space<vmem>>, vector<128x128xf32>,
    return
  }
  func.func @transform_0(%arg0: i32, %arg1: i32) -> (i32, i32) {
    %c0_i32 = arith.constant 0 : i32
    %c0_i32_0 = arith.constant 0 : i32
    return %arg0, %c0_i32 : i32, i32
  }
  func.func @transform_1(%arg0: i32, %arg1: i32) -> (i32, i32) {
    %c0_i32 = arith.constant 0 : i32
    %c0_i32_0 = arith.constant 0 : i32
    return %c0_i32, %arg1 : i32, i32
  }
  func.func @transform_2(%arg0: i32, %arg1: i32) -> (i32, i32) {
    %c0_i32 = arith.constant 0 : i32
    %c0_i32_0 = arith.constant 0 : i32
    return %c0_i32, %arg1 : i32, i32
  }
  func.func @transform_3(%arg0: i32, %arg1: i32) -> (i32, i32) {
    %c0_i32 = arith.constant 0 : i32
    return %arg0, %arg1 : i32, i32
  }
}

</mosaic_0001>

<bundles_post_ra>
// kernel: downsample_forward.1
= control target key start
LH: loop header
LB: loop body
LE: loop exit
PB: predicated region body
PF: predicated region fallthrough
CT: control target
= control target key end

     0   :  { %vm42_vm0 = vcmask 293888   ;;  %vm91_vm1 = vcmask 1043456   ;;  %s497_s1 = inlined_call_operand.vmem [shape: f32[36,128], index: 1, kind: input, shape index: {}]   ;;  %s498_s0 = inlined_call_operand.vmem [shape: f32[128,36], index: 0, kind: input, shape index: {}]   ;;  %s499_s2 = inlined_call_operand.vmem [shape: f32[1,128], index: 2, kind: input, shape index: {}]   ;;  %s500_s3 = inlined_call_operand.vmem [shape: f32[128,128], index: 3, kind: output, shape index: {}]  }
   0x1   :  { %v30_v0 = vld [vmem:[%s497_s1] sm:$0xff]  ;;  %v31_v1 = vld [vmem:[%s497_s1 + $0x8] sm:$0xff]  ;;  %v32_v2 = vld [vmem:[%s497_s1 + $0x10] sm:$0xff] }
   0x2   :  { %v333_v3 = vpack.c.bf16 %v31_v1, %v30_v0  ;;  %v33_v4 = vld [vmem:[%s497_s1 + $0x18] sm:$0xff]  ;;  %v14_v5 = vld [vmem:[%s498_s0] sm:$0xff]  ;;  %v15_v9 = vld [vmem:[%s498_s0 + $0x8] sm:$0xff] }
   0x3   :  { %v337_v6 = vpack.c.bf16 %v33_v4, %v32_v2  ;;  %309 = vmatprep.mubr.msk.f32.mxu0 %vm42_vm0, %v14_v5  ;;  %v22_v7 = vld [vmem:[%s498_s0 + $0x40] sm:$0xff]  ;;  %v23_v10 = vld [vmem:[%s498_s0 + $0x48] sm:$0xff]  ;;  %v16_v11 = vld [vmem:[%s498_s0 + $0x10] sm:$0xff] }
   0x4   :  { %334 = vmatprep.subr.bf16.mxu0 %v333_v3  ;;  %341 = vmatprep.subr.bf16.mxu1 %v333_v3  ;;  %v34_v8 = vld [vmem:[%s497_s1 + $0x20] sm:$0xf]  ;;  %v24_v12 = vld [vmem:[%s498_s0 + $0x50] sm:$0xff]  ;;  %v17_v13 = vld [vmem:[%s498_s0 + $0x18] sm:$0xff] }
   0x5   :  { %336 = vmatpush3.bf16.msra.mxu0 %v333_v3  ;;  %344 = vmatpush3.bf16.msra.mxu1 %v333_v3  ;;  %v25_v14 = vld [vmem:[%s498_s0 + $0x58] sm:$0xff]  ;;  %v18_v15 = vld [vmem:[%s498_s0 + $0x20] sm:$0xff]  ;;  %v19_v17 = vld [vmem:[%s498_s0 + $0x28] sm:$0xff] }
   0x6   :  { %338 = vmatprep.subr.bf16.mxu0 %v337_v6  ;;  %342 = vmatprep.subr.bf16.mxu1 %v337_v6  ;;  %v26_v16 = vld [vmem:[%s498_s0 + $0x60] sm:$0xff]  ;;  %v27_v18 = vld [vmem:[%s498_s0 + $0x68] sm:$0xff]  ;;  %v20_v19 = vld [vmem:[%s498_s0 + $0x30] sm:$0xff] }
   0x7   :  { %321 = vmatprep.mubr.msk.f32.mxu1 %vm42_vm0, %v22_v7  ;;  %v28_v20 = vld [vmem:[%s498_s0 + $0x70] sm:$0xff]  ;;  %v21_v21 = vld [vmem:[%s498_s0 + $0x38] sm:$0xff]  ;;  %v260_v23 = vld [vmem:[%s499_s2] ss:$0 sm:$0xff] }
   0x8   :  { %v29_v22 = vld [vmem:[%s498_s0 + $0x78] sm:$0xff] }
   0x9   :  { %340 = vmatpush3.bf16.msra.mxu0 %v337_v6  ;;  %345 = vmatpush3.bf16.msra.mxu1 %v337_v6 }
   0xa   :  { %307 = vmatprep.subr.msk.mxu0 %vm91_vm1, %v34_v8  ;;  %343 = vmatprep.subr.msk.mxu1 %vm91_vm1, %v34_v8 }
   0xd   :  { %308 = vmatpush3.msk.msra.mxu0 %vm91_vm1, %v34_v8  ;;  %346 = vmatpush3.msk.msra.mxu1 %vm91_vm1, %v34_v8 }
   0xe   :  { %310 = vmatmul.mubr.msk.f32.vlgmr.msra.gmra.mrb[0].mxu0 %vm42_vm0, %v15_v9  ;;  %322 = vmatmul.mubr.msk.f32.vlgmr.msra.gmra.mrb[0].mxu1 %vm42_vm0, %v23_v10 }
   0xf   :  { %312 = vmatprep.mubr.msk.f32.mxu0 %vm42_vm0, %v16_v11  ;;  %324 = vmatprep.mubr.msk.f32.mxu1 %vm42_vm0, %v24_v12 }
  0x12   :  { %313 = vmatmul.mubr.msk.f32.gmra.mrb[2].mxu0 %vm42_vm0, %v17_v13  ;;  %325 = vmatmul.mubr.msk.f32.gmra.mrb[2].mxu1 %vm42_vm0, %v25_v14 }
  0x13   :  { %315 = vmatprep.mubr.msk.f32.mxu0 %vm42_vm0, %v18_v15  ;;  %327 = vmatprep.mubr.msk.f32.mxu1 %vm42_vm0, %v26_v16 }
  0x16   :  { %316 = vmatmul.mubr.msk.f32.gmra.mrb[4].mxu0 %vm42_vm0, %v19_v17  ;;  %328 = vmatmul.mubr.msk.f32.gmra.mrb[4].mxu1 %vm42_vm0, %v27_v18 }
  0x17   :  { %318 = vmatprep.mubr.msk.f32.mxu0 %vm42_vm0, %v20_v19  ;;  %330 = vmatprep.mubr.msk.f32.mxu1 %vm42_vm0, %v28_v20 }
  0x1a   :  { %319 = vmatmul.mubr.msk.f32.gmra.mrb[6].mxu0 %vm42_vm0, %v21_v21  ;;  %331 = vmatmul.mubr.msk.f32.gmra.mrb[6].mxu1 %vm42_vm0, %v29_v22 }
  0xe1   :  { %v311_v24 = vpop.f32.mrb[0].mxu0  ;;  %v323_v25 = vpop.f32.mrb[0].mxu1 }
  0xe2   :  { %v167_v26 = vadd.f32 %v311_v24, %v260_v23  ;;  %v207_v27 = vadd.f32 %v323_v25, %v260_v23  ;;  %v161_v28 = vpop.f32.mrb[1].mxu0  ;;  %v201_v29 = vpop.f32.mrb[1].mxu1 }
  0xe3   :  { %v162_v30 = vadd.f32 %v260_v23, %v161_v28  ;;  %v202_v31 = vadd.f32 %v260_v23, %v201_v29 }
  0xe4   :  { %241 = vst [vmem:[%s500_s3 + $0x8] sm:$0xff] %v167_v26  ;;  %249 = vst [vmem:[%s500_s3 + $0x48] sm:$0xff] %v207_v27 }
  0xe5   :  { %240 = vst [vmem:[%s500_s3] sm:$0xff] %v162_v30  ;;  %248 = vst [vmem:[%s500_s3 + $0x40] sm:$0xff] %v202_v31  ;;  %v314_v32 = vpop.f32.mrb[2].mxu0  ;;  %v326_v33 = vpop.f32.mrb[2].mxu1 }
  0xe6   :  { %v177_v34 = vadd.f32 %v314_v32, %v260_v23  ;;  %v217_v35 = vadd.f32 %v326_v33, %v260_v23  ;;  %v171_v36 = vpop.f32.mrb[3].mxu0  ;;  %v211_v37 = vpop.f32.mrb[3].mxu1 }
  0xe7   :  { %v172_v38 = vadd.f32 %v260_v23, %v171_v36  ;;  %v212_v39 = vadd.f32 %v260_v23, %v211_v37 }
  0xe8   :  { %243 = vst [vmem:[%s500_s3 + $0x18] sm:$0xff] %v177_v34  ;;  %251 = vst [vmem:[%s500_s3 + $0x58] sm:$0xff] %v217_v35 }
  0xe9   :  { %242 = vst [vmem:[%s500_s3 + $0x10] sm:$0xff] %v172_v38  ;;  %250 = vst [vmem:[%s500_s3 + $0x50] sm:$0xff] %v212_v39  ;;  %v317_v40 = vpop.f32.mrb[4].mxu0  ;;  %v329_v41 = vpop.f32.mrb[4].mxu1 }
  0xea   :  { %v187_v42 = vadd.f32 %v317_v40, %v260_v23  ;;  %v227_v43 = vadd.f32 %v329_v41, %v260_v23  ;;  %v181_v44 = vpop.f32.mrb[5].mxu0  ;;  %v221_v45 = vpop.f32.mrb[5].mxu1 }
  0xeb   :  { %v182_v46 = vadd.f32 %v260_v23, %v181_v44  ;;  %v222_v47 = vadd.f32 %v260_v23, %v221_v45 }
  0xec   :  { %245 = vst [vmem:[%s500_s3 + $0x28] sm:$0xff] %v187_v42  ;;  %253 = vst [vmem:[%s500_s3 + $0x68] sm:$0xff] %v227_v43 }
  0xed   :  { %244 = vst [vmem:[%s500_s3 + $0x20] sm:$0xff] %v182_v46  ;;  %252 = vst [vmem:[%s500_s3 + $0x60] sm:$0xff] %v222_v47  ;;  %v320_v48 = vpop.f32.mrb[6].mxu0  ;;  %v332_v49 = vpop.f32.mrb[6].mxu1 }
  0xee   :  { %v197_v50 = vadd.f32 %v320_v48, %v260_v23  ;;  %v237_v51 = vadd.f32 %v332_v49, %v260_v23  ;;  %v191_v52 = vpop.f32.mrb[7].mxu0  ;;  %v231_v53 = vpop.f32.mrb[7].mxu1 }
  0xef   :  { %v192_v54 = vadd.f32 %v260_v23, %v191_v52  ;;  %v232_v55 = vadd.f32 %v260_v23, %v231_v53 }
  0xf0   :  { %247 = vst [vmem:[%s500_s3 + $0x38] sm:$0xff] %v197_v50  ;;  %255 = vst [vmem:[%s500_s3 + $0x78] sm:$0xff] %v237_v51 }
  0xf1   :  { %246 = vst [vmem:[%s500_s3 + $0x30] sm:$0xff] %v192_v54  ;;  %254 = vst [vmem:[%s500_s3 + $0x70] sm:$0xff] %v232_v55 }

</bundles_post_ra>
